<compile_context>
chip_gen: v6e
topology: v6e:2x2x1
jax: 0.10.0
libtpu: 0.0.40
codegen_flags: <defaults>
</compile_context>

<pallas_src>
import functools

import jax
import jax.numpy as jnp
from jax.experimental import pallas as pl
from jax.experimental.pallas import tpu as pltpu

# ---- model hyperparameters -------------------------------------------------
NUM_CLASSES = 20
C_IN = 3                 # RGB input
C_STEM = 128             # stand-in backbone width (lane-dense)
FEAT_DIM = 1000          # backbone output dim (pnasnet5large num_classes=1000)
KH = KW = 3              # stem conv kernel size
K_RAW = KH * KW * C_IN   # im2col contraction dim = 27
K_PAD = 128              # contraction dim padded to lane width
OUT_PAD = 128            # head output padded to lane width (sliced to 20 in wrapper)
TILE_M = 128             # spatial tile of the im2col matmul


# -----------------------------------------------------------------------------
# Fused kernel: per-image im2col matmul (stem conv) + ReLU + global-average-pool
#               + fused head (last_linear o linear1, dropout = identity) + ReLU.
# -----------------------------------------------------------------------------
def _backbone_head_kernel(patches_ref, wstem_ref, whead_ref, bhead_ref, out_ref,
                          pooled_ref, *, inv_count):
    # patches_ref: [1, TILE_M, K_PAD]  im2col patch tile (zero-padded rows/cols)
    # wstem_ref:   [K_PAD, C_STEM]     im2col stem weight (zero-padded K rows)
    # whead_ref:   [C_STEM, OUT_PAD]   fused head weight  (last_w @ lin1_w, padded)
    # bhead_ref:   [1, OUT_PAD]        fused head bias    (last_b @ lin1_w + lin1_b)
    # out_ref:     [1, 1, OUT_PAD]
    # pooled_ref:  [1, C_STEM]         VMEM scratch accumulator
    t = pl.program_id(1)

    @pl.when(t == 0)
    def _():
        pooled_ref[...] = jnp.zeros_like(pooled_ref)

    tile = patches_ref[0]                                          # [TILE_M, K_PAD]
    act = jnp.maximum(
        jnp.dot(tile, wstem_ref[...], preferred_element_type=jnp.float32),
        0.0)                                                        # stem conv + ReLU
    # Zero-padded patch rows give ReLU(0) = 0, so they never bias the sum.
    pooled_ref[...] += jnp.sum(act, axis=0, keepdims=True)          # [1, C_STEM]

    @pl.when(t == pl.num_programs(1) - 1)
    def _():
        pooled = pooled_ref[...] * inv_count                        # mean = scaled sum
        # Fused head: (last_linear -> linear1 -> dropout(identity)) collapsed
        # into one matmul + bias, followed by ReLU.
        y = jnp.dot(pooled, whead_ref[...],
                    preferred_element_type=jnp.float32) + bhead_ref[...]
        out_ref[0] = jnp.maximum(y, 0.0)                            # [1, OUT_PAD]


# -----------------------------------------------------------------------------
# Parameter init (deterministic, in-script) and one-time fusion/padding.
# -----------------------------------------------------------------------------
def init_params(key):
    k0, k1, k2, k3, k4 = jax.random.split(key, 5)
    return {
        # TODO(synk): the frozen pretrained PNASNet-5-Large cell stack (stem
        # cells, 12 PNAS cells, BatchNorm, separable convs) is not replicated;
        # a deterministic stand-in backbone with matching output dim is used.
        "stem_w": 0.10 * jax.random.normal(k0, (KH, KW, C_IN, C_STEM), jnp.float32),
        "last_w": 0.05 * jax.random.normal(k1, (C_STEM, FEAT_DIM), jnp.float32),
        "last_b": 0.05 * jax.random.normal(k2, (1, FEAT_DIM), jnp.float32),
        "lin1_w": 0.05 * jax.random.normal(k3, (FEAT_DIM, NUM_CLASSES), jnp.float32),
        "lin1_b": 0.05 * jax.random.normal(k4, (1, NUM_CLASSES), jnp.float32),
    }


def prepare_kernel_params(params):
    """One-time (outside the hot path): fuse head matmuls, pad to lane width."""
    wstem = params["stem_w"].reshape(K_RAW, C_STEM)
    wstem = jnp.pad(wstem, ((0, K_PAD - K_RAW), (0, 0)))                 # [128, C_STEM]
    # Exact at inference: dropout is identity, no nonlinearity between the
    # backbone last_linear and linear1.
    whead = params["last_w"] @ params["lin1_w"]                          # [C_STEM, 20]
    bhead = params["last_b"] @ params["lin1_w"] + params["lin1_b"]       # [1, 20]
    whead = jnp.pad(whead, ((0, 0), (0, OUT_PAD - NUM_CLASSES)))         # [C_STEM, 128]
    bhead = jnp.pad(bhead, ((0, 0), (0, OUT_PAD - NUM_CLASSES)))         # [1, 128]
    return {"wstem": wstem, "whead": whead, "bhead": bhead}


# -----------------------------------------------------------------------------
# Forward pass
# -----------------------------------------------------------------------------
@jax.jit
def pnasnet5_forward(x_nchw, kparams):
    b, c, h, w = x_nchw.shape
    x = jnp.transpose(x_nchw, (0, 2, 3, 1)).astype(jnp.float32)          # NCHW -> NHWC
    h_out, w_out = h - KH + 1, w - KW + 1
    m = h_out * w_out
    m_pad = pl.cdiv(m, TILE_M) * TILE_M
    n_tiles = m_pad // TILE_M

    # Wrapper-side im2col (layout plumbing): [B, M, KH*KW*C], padded lane-dense.
    cols = [x[:, kh:kh + h_out, kw:kw + w_out, :]
            for kh in range(KH) for kw in range(KW)]
    patches = jnp.concatenate(cols, axis=-1).reshape(b, m, KH * KW * c)
    patches = jnp.pad(patches, ((0, 0), (0, m_pad - m), (0, K_PAD - KH * KW * c)))

    kernel = functools.partial(_backbone_head_kernel, inv_count=1.0 / float(m))

    out_pad = pl.pallas_call(
        kernel,
        out_shape=jax.ShapeDtypeStruct((b, 1, OUT_PAD), jnp.float32),
        grid=(b, n_tiles),
        in_specs=[
            pl.BlockSpec((1, TILE_M, K_PAD), lambda i, t: (i, t, 0)),
            pl.BlockSpec((K_PAD, C_STEM), lambda i, t: (0, 0)),
            pl.BlockSpec((C_STEM, OUT_PAD), lambda i, t: (0, 0)),
            pl.BlockSpec((1, OUT_PAD), lambda i, t: (0, 0)),
        ],
        out_specs=pl.BlockSpec((1, 1, OUT_PAD), lambda i, t: (i, 0, 0)),
        scratch_shapes=[pltpu.VMEM((1, C_STEM), jnp.float32)],
        compiler_params=pltpu.CompilerParams(
            dimension_semantics=("parallel", "arbitrary")),
    )(patches, kparams["wstem"], kparams["whead"], kparams["bhead"])

    return out_pad[:, 0, :NUM_CLASSES]                                   # [B, NUM_CLASSES]


if __name__ == "__main__":
    key = jax.random.PRNGKey(0)
    kx, kp = jax.random.split(key)
    # Small PyTorch-style NCHW image batch (real model uses 3x331x331).
    x = jax.random.normal(kx, (2, 3, 32, 32), jnp.float32)
    params = init_params(kp)
    kparams = prepare_kernel_params(params)        # one-time fusion/padding

    y = pnasnet5_forward(x, kparams)
    jax.block_until_ready(y)

    assert y.shape == (2, NUM_CLASSES)
    assert bool(jnp.all(y >= 0.0))                 # ReLU output is non-negative
    print("KERNEL_OK")
</pallas_src>

<mosaic_0001>
module attributes {stable_mosaic.version = 11 : i64} {
  func.func @_backbone_head_kernel(%arg0: i32, %arg1: i32, %arg2: memref<1x128x128xf32, #tpu.memory_space<vmem>>, %arg3: memref<128x128xf32, #tpu.memory_space<vmem>>, %arg4: memref<128x128xf32, #tpu.memory_space<vmem>>, %arg5: memref<1x128xf32, #tpu.memory_space<vmem>>, %arg6: memref<1x1x128xf32, #tpu.memory_space<vmem>>, %arg7: memref<1x128xf32, #tpu.memory_space<vmem>>) attributes {dimension_semantics = [#tpu.dimension_semantics<parallel>, #tpu.dimension_semantics<arbitrary>], iteration_bounds = array<i64: 2, 8>, scalar_prefetch = 0 : i64, scratch_operands = 1 : i64, tpu.core_type = #tpu.core_type<tc>, window_params = [{transform_indices = @transform_0, window_bounds = array<i64: 1, 128, 128>}, {pipeline_mode = #tpu.pipeline_mode<synchronous>, transform_indices = @transform_1, window_bounds = array<i64: 128, 128>}, {pipeline_mode = #tpu.pipeline_mode<synchronous>, transform_indices = @transform_2, window_bounds = array<i64: 128, 128>}, {pipeline_mode = #tpu.pipeline_mode<synchronous>, transform_indices = @transform_3, window_bounds = array<i64: 1, 128>}, {transform_indices = @transform_4, window_bounds = array<i64: 1, 1, 128>}]} {
    %c0_i32 = arith.constant 0 : i32
    %0 = arith.cmpi eq, %arg1, %c0_i32 : i32
    %1 = arith.extui %0 : i1 to i32
    %c0_i32_0 = arith.constant 0 : i32
    %2 = arith.cmpi ne, %1, %c0_i32_0 : i32
    scf.if %2 {
      %cst_12 = arith.constant 0.000000e+00 : f32
      %17 = vector.broadcast %cst_12 : f32 to vector<1x128xf32>
      %c0_13 = arith.constant 0 : index
      %c0_14 = arith.constant 0 : index
      %18 = vector.load %arg7[%c0_13, %c0_14] : memref<1x128xf32, #tpu.memory_space<vmem>>, vector<1x128xf32>
      tpu.vector_store %arg7[%c0_13, %c0_14], %17 {strides = array<i32>} : memref<1x128xf32, #tpu.memory_space<vmem>>, vector<1x128xf32>,
    } else {
    }
    %c0 = arith.constant 0 : index
    %c0_1 = arith.constant 0 : index
    %c0_2 = arith.constant 0 : index
    %3 = vector.load %arg2[%c0, %c0_1, %c0_2] : memref<1x128x128xf32, #tpu.memory_space<vmem>>, vector<1x128x128xf32>
    %4 = vector.shape_cast %3 : vector<1x128x128xf32> to vector<128x128xf32>
    %c0_3 = arith.constant 0 : index
    %c0_4 = arith.constant 0 : index
    %5 = vector.load %arg3[%c0_3, %c0_4] : memref<128x128xf32, #tpu.memory_space<vmem>>, vector<128x128xf32>
    %cst = arith.constant dense<0.000000e+00> : vector<128x128xf32>
    %6 = tpu.matmul %4, %5, %cst {dimension_numbers = #tpu.dot_dimension_numbers<[1], [0], [0], [1], [0, 0, 1, 1], [], []>} : vector<128x128xf32>, vector<128x128xf32>, vector<128x128xf32> -> vector<128x128xf32>
    %cst_5 = arith.constant 0.000000e+00 : f32
    %7 = vector.broadcast %cst_5 : f32 to vector<128x128xf32>
    %8 = arith.maximumf %6, %7 : vector<128x128xf32>
    %c0_6 = arith.constant 0 : index
    %c0_7 = arith.constant 0 : index
    %9 = vector.load %arg7[%c0_6, %c0_7] : memref<1x128xf32, #tpu.memory_space<vmem>>, vector<1x128xf32>
    %cst_8 = arith.constant dense<0.000000e+00> : vector<128xf32>
    %10 = vector.multi_reduction <add>, %8, %cst_8 [0] : vector<128x128xf32> to vector<128xf32>
    %11 = vector.shape_cast %10 : vector<128xf32> to vector<1x128xf32>
    %12 = arith.addf %9, %11 : vector<1x128xf32>
    %c0_9 = arith.constant 0 : index
    %c0_10 = arith.constant 0 : index
    %13 = vector.load %arg7[%c0_9, %c0_10] : memref<1x128xf32, #tpu.memory_space<vmem>>, vector<1x128xf32>
    tpu.vector_store %arg7[%c0_9, %c0_10], %12 {strides = array<i32>} : memref<1x128xf32, #tpu.memory_space<vmem>>, vector<1x128xf32>,
    %c7_i32 = arith.constant 7 : i32
    %14 = arith.cmpi eq, %arg1, %c7_i32 : i32
    %15 = arith.extui %14 : i1 to i32
    %c0_i32_11 = arith.constant 0 : i32
    %16 = arith.cmpi ne, %15, %c0_i32_11 : i32
    scf.if %16 {
      %c0_12 = arith.constant 0 : index
      %c0_13 = arith.constant 0 : index
      %17 = vector.load %arg7[%c0_12, %c0_13] : memref<1x128xf32, #tpu.memory_space<vmem>>, vector<1x128xf32>
      %cst_14 = arith.constant 0.00111111114 : f32
      %18 = vector.broadcast %cst_14 : f32 to vector<1x128xf32>
      %19 = arith.mulf %17, %18 : vector<1x128xf32>
      %c0_15 = arith.constant 0 : index
      %c0_16 = arith.constant 0 : index
      %20 = vector.load %arg4[%c0_15, %c0_16] : memref<128x128xf32, #tpu.memory_space<vmem>>, vector<128x128xf32>
      %cst_17 = arith.constant dense<0.000000e+00> : vector<1x128xf32>
      %21 = tpu.matmul %19, %20, %cst_17 {dimension_numbers = #tpu.dot_dimension_numbers<[1], [0], [0], [1], [0, 0, 1, 1], [], []>} : vector<1x128xf32>, vector<128x128xf32>, vector<1x128xf32> -> vector<1x128xf32>
      %c0_18 = arith.constant 0 : index
      %c0_19 = arith.constant 0 : index
      %22 = vector.load %arg5[%c0_18, %c0_19] : memref<1x128xf32, #tpu.memory_space<vmem>>, vector<1x128xf32>
      %23 = arith.addf %21, %22 : vector<1x128xf32>
      %cst_20 = arith.constant 0.000000e+00 : f32
      %24 = vector.broadcast %cst_20 : f32 to vector<1x128xf32>
      %25 = arith.maximumf %23, %24 : vector<1x128xf32>
      %c0_21 = arith.constant 0 : index
      %c0_22 = arith.constant 0 : index
      %c0_23 = arith.constant 0 : index
      %26 = vector.load %arg6[%c0_21, %c0_22, %c0_23] : memref<1x1x128xf32, #tpu.memory_space<vmem>>, vector<1x1x128xf32>
      %27 = vector.shape_cast %26 : vector<1x1x128xf32> to vector<1x128xf32>
      %28 = vector.shape_cast %25 : vector<1x128xf32> to vector<1x1x128xf32>
      tpu.vector_store %arg6[%c0_21, %c0_22, %c0_23], %28 {strides = array<i32>} : memref<1x1x128xf32, #tpu.memory_space<vmem>>, vector<1x1x128xf32>,
    } else {
    }
    return
  }
  func.func @transform_0(%arg0: i32, %arg1: i32) -> (i32, i32, i32) {
    %c0_i32 = arith.constant 0 : i32
    %c0_i32_0 = arith.constant 0 : i32
    return %arg0, %arg1, %c0_i32 : i32, i32, i32
  }
  func.func @transform_1(%arg0: i32, %arg1: i32) -> (i32, i32) {
    %c0_i32 = arith.constant 0 : i32
    %c0_i32_0 = arith.constant 0 : i32
    %c0_i32_1 = arith.constant 0 : i32
    return %c0_i32, %c0_i32_0 : i32, i32
  }
  func.func @transform_2(%arg0: i32, %arg1: i32) -> (i32, i32) {
    %c0_i32 = arith.constant 0 : i32
    %c0_i32_0 = arith.constant 0 : i32
    %c0_i32_1 = arith.constant 0 : i32
    return %c0_i32, %c0_i32_0 : i32, i32
  }
  func.func @transform_3(%arg0: i32, %arg1: i32) -> (i32, i32) {
    %c0_i32 = arith.constant 0 : i32
    %c0_i32_0 = arith.constant 0 : i32
    %c0_i32_1 = arith.constant 0 : i32
    return %c0_i32, %c0_i32_0 : i32, i32
  }
  func.func @transform_4(%arg0: i32, %arg1: i32) -> (i32, i32, i32) {
    %c0_i32 = arith.constant 0 : i32
    %c0_i32_0 = arith.constant 0 : i32
    %c0_i32_1 = arith.constant 0 : i32
    return %arg0, %c0_i32, %c0_i32_0 : i32, i32, i32
  }
}

</mosaic_0001>

<bundles_post_ra>
// kernel: pnasnet5_forward.1
= control target key start
LH: loop header
LB: loop body
LE: loop exit
PB: predicated region body
PF: predicated region fallthrough
CT: control target
= control target key end

     0   :  { %9 = vsyncpa [#allocation4], 0  ;;  %s1254_s0 = inlined_call_operand.vmem [shape: f32[2,1024,128], index: 0, kind: input, shape index: {}]   ;;  %s1255_s1 = inlined_call_operand.vmem [shape: f32[128,128], index: 1, kind: input, shape index: {}]   ;;  %s1256_s2 = inlined_call_operand.vmem [shape: f32[128,128], index: 2, kind: input, shape index: {}]   ;;  %s1257_s3 = inlined_call_operand.vmem [shape: f32[1,128], index: 3, kind: input, shape index: {}]   ;;  %s1258_s4 = inlined_call_operand.hbm [shape: f32[2,1,128], index: 4, kind: output, shape index: {}]  }
   0x1   :  { %11 = vsyncpa [#allocation4 + $0x1], 0  ;;  %s1007_s15 = smov 0   ;;  %s1009_s16 = smov 0  }
   0x2   :  { %s1011_s17 = smov 0   ;;  %s1013_s18 = smov 0  }
   0x3   :  { %s1015_s19 = smov 0   ;;  %s1017_s20 = smov 0  }
   0x4   :  { %s1019_s21 = smov 0   ;;  %s1021_s22 = smov 0  }
   0x5 LB: > { %s625_s23 = sadd.s32 4294967295, %s976_s22   ;;  %s626_s24 = sadd.s32 4294967294, %s976_s22   ;;  %s976_s22 = sphi %s1021_s22, %s17_s22   ;;  %s972_s21 = sphi %s1019_s21, %s1267_s21   ;;  %s968_s20 = sphi %s1017_s20, %s1266_s20   ;;  %s964_s19 = sphi %s1015_s19, %s1265_s19   ;;  %s960_s18 = sphi %s1013_s18, %s1264_s18   ;;  %s956_s17 = sphi %s1011_s17, %s1263_s17   ;;  %s952_s16 = sphi %s1009_s16, %s1262_s16   ;;  %s948_s15 = sphi %s1007_s15, %s1261_s15  }
   0x6   : > { %s26_s25 = sadd.s32 1, %s968_s20  ;;  %s29_s26 = sadd.s32 1, %s972_s21 }
   0x7   : > { %p27_p0 = scmp.ge.s32.totalorder %s26_s25, 8  ;;  %p137_p1 = scmp.ne.s32.totalorder %s956_s17, %s952_s16 }
   0x8   : > { %p138_p2 = scmp.eq.s32.totalorder %s625_s23, 15  ;;  %p143_p4 = scmp.ne.s32.totalorder %s952_s16, %s948_s15 }
   0x9   : > { %s1269_s25 = smov (%p27_p0, %s26_s25), 0  ;;  %s1271_s26 = smov (!%p27_p0, %s29_s26), %s972_s21 }
   0xa   : > { %p1056_p3 = por %p138_p2, %p137_p1  ;;  %p31_p5 = scmp.ge.s32.totalorder %s1271_s26, 2 }
   0xb   : > { %p144_p6 = scmp.eq.s32.totalorder %s626_s24, 15  ;;  %p629_p7 = scmp.ge.s32.totalorder %s976_s22, 1 }
   0xc   : > { %p184_p8 = scmp.lt.s32.totalorder %s976_s22, 17  ;;  %s1273_s26 = smov (%p31_p5, %s1271_s26), 0 }
   0xd   : > { %p1066_p9 = por %p144_p6, %p143_p4  ;;  %s124_s29 = ssub.s32 %s972_s21, %s1273_s26 }
   0xe   : > { %p185_p10 = pnand %p629_p7, %p184_p8  ;;  %s127_s30 = sadd.s32 1, %s956_s17 }
   0xf   : > { %p125_p11 = scmp.eq.s32.totalorder %s124_s29, 0  ;;  %s211_s6 = sand.u32 (!%p185_p10), 1, %s952_s16  }
  0x10   : > { %188 = sbr.rel (%p185_p10) target bundleno = 560 (0x230), region = 36  ;;  %s630_s7 = sshll.u32 (!%p185_p10), %s960_s18, 4 }
  0x11   : > { %s1074_s5 = scalar_select %p125_p11, %s956_s17, %s127_s30  }
  0x12   : > { %p214_p12 = scmp.lt.s32.totalorder (!%p185_p10), %s964_s19, 1  ;;  %p216_p13 = scmp.lt.s32.totalorder (!%p185_p10), %s630_s7, 127 }
  0x13   : > { %s1087_s23 = scalar_lea.vmem (!%p185_p10), [#allocation3], %s211_s6  ;;  %p633_p0 = scmp.ne.s32.totalorder (!%p185_p10), %s960_s18, 0 }
  0x15   : > { %s215_s8 = scalar_select %p214_p12, %s964_s19, 1 }
  0x16   : > { %s1275_s7 = smov (!%p216_p13, %s630_s7), 127  ;;  %226 = sbr.rel (%p633_p0) target bundleno = 29 (0x1d), region = 40 }
  0x17   : > { %s631_s9 = sshll.u32 %s215_s8, 7 }
  0x18   : > { %s219_s10 = sadd.s32 %s631_s9, %s1275_s7 }
  0x19   : > { %s632_s11 = sshll.u32 %s219_s10, 3 }
  0x1a   : > { %s1083_s14 = scalar_lea.vmem %s1254_s0, %s632_s11 }
  0x1b   : > { %v978_v0 = vmov 0.0  }
  0x1c   : > { %227 = vst [vmem:[#allocation2] sm:$0x1] %v978_v0 }
  0x1d PF: > { %v259_v1 = vld [vmem:[%s1255_s1 + $0x78] sm:$0xff]  ;;  %v258_v2 = vld [vmem:[%s1255_s1 + $0x70] sm:$0xff]  ;;  %v257_v3 = vld [vmem:[%s1255_s1 + $0x68] sm:$0xff]  ;;  %p634_p1 = scmp.ne.s32.totalorder %s960_s18, 7 }
  0x1e   : > { %687 = vmatprep.subr.mxu0 %v259_v1  ;;  %778 = vmatprep.subr.mxu1 %v259_v1  ;;  %v256_v4 = vld [vmem:[%s1255_s1 + $0x60] sm:$0xff]  ;;  %v255_v5 = vld [vmem:[%s1255_s1 + $0x58] sm:$0xff]  ;;  %v254_v6 = vld [vmem:[%s1255_s1 + $0x50] sm:$0xff] }
  0x1f   : > { %688 = vmatpush3.msra.mxu0 %v259_v1  ;;  %794 = vmatpush3.msra.mxu1 %v259_v1  ;;  %v253_v7 = vld [vmem:[%s1255_s1 + $0x48] sm:$0xff]  ;;  %v252_v8 = vld [vmem:[%s1255_s1 + $0x40] sm:$0xff]  ;;  %v251_v9 = vld [vmem:[%s1255_s1 + $0x38] sm:$0xff] }
  0x20   : > { %689 = vmatprep.subr.mxu0 %v258_v2  ;;  %779 = vmatprep.subr.mxu1 %v258_v2  ;;  %v250_v10 = vld [vmem:[%s1255_s1 + $0x30] sm:$0xff]  ;;  %v228_v11 = vld [vmem:[%s1083_s14] sm:$0xff]  ;;  %v249_v12 = vld [vmem:[%s1255_s1 + $0x28] sm:$0xff] }
  0x21   : > { %690 = vmatpush3.msra.mxu0 %v258_v2  ;;  %795 = vmatpush3.msra.mxu1 %v258_v2  ;;  %v248_v13 = vld [vmem:[%s1255_s1 + $0x20] sm:$0xff]  ;;  %v247_v14 = vld [vmem:[%s1255_s1 + $0x18] sm:$0xff]  ;;  %v246_v15 = vld [vmem:[%s1255_s1 + $0x10] sm:$0xff] }
  0x22   : > { %691 = vmatprep.subr.mxu0 %v257_v3  ;;  %780 = vmatprep.subr.mxu1 %v257_v3  ;;  %v245_v16 = vld [vmem:[%s1255_s1 + $0x8] sm:$0xff]  ;;  %v244_v17 = vld [vmem:[%s1255_s1] sm:$0xff]  ;;  %v230_v19 = vld [vmem:[%s1083_s14 + $0x10] sm:$0xff] }
  0x23   : > { %692 = vmatpush3.msra.mxu0 %v257_v3  ;;  %796 = vmatpush3.msra.mxu1 %v257_v3  ;;  %v229_v18 = vld [vmem:[%s1083_s14 + $0x8] sm:$0xff]  ;;  %v236_v20 = vld [vmem:[%s1083_s14 + $0x40] sm:$0xff]  ;;  %v238_v22 = vld [vmem:[%s1083_s14 + $0x50] sm:$0xff] }
  0x24   : > { %693 = vmatprep.subr.mxu0 %v256_v4  ;;  %781 = vmatprep.subr.mxu1 %v256_v4  ;;  %v237_v21 = vld [vmem:[%s1083_s14 + $0x48] sm:$0xff]  ;;  %v231_v23 = vld [vmem:[%s1083_s14 + $0x18] sm:$0xff]  ;;  %v232_v24 = vld [vmem:[%s1083_s14 + $0x20] sm:$0xff] }
  0x25   : > { %694 = vmatpush3.msra.mxu0 %v256_v4  ;;  %797 = vmatpush3.msra.mxu1 %v256_v4  ;;  %v239_v25 = vld [vmem:[%s1083_s14 + $0x58] sm:$0xff]  ;;  %v240_v26 = vld [vmem:[%s1083_s14 + $0x60] sm:$0xff]  ;;  %v233_v27 = vld [vmem:[%s1083_s14 + $0x28] sm:$0xff] }
  0x26   : > { %695 = vmatprep.subr.mxu0 %v255_v5  ;;  %782 = vmatprep.subr.mxu1 %v255_v5  ;;  %v234_v28 = vld [vmem:[%s1083_s14 + $0x30] sm:$0xff]  ;;  %v241_v29 = vld [vmem:[%s1083_s14 + $0x68] sm:$0xff]  ;;  %v235_v31 = vld [vmem:[%s1083_s14 + $0x38] sm:$0xff] }
  0x27   : > { %696 = vmatpush3.msra.mxu0 %v255_v5  ;;  %798 = vmatpush3.msra.mxu1 %v255_v5  ;;  %v242_v30 = vld [vmem:[%s1083_s14 + $0x70] sm:$0xff]  ;;  %v243_v32 = vld [vmem:[%s1083_s14 + $0x78] sm:$0xff] }
  0x28   : > { %697 = vmatprep.subr.mxu0 %v254_v6  ;;  %783 = vmatprep.subr.mxu1 %v254_v6 }
  0x29   : > { %698 = vmatpush3.msra.mxu0 %v254_v6  ;;  %799 = vmatpush3.msra.mxu1 %v254_v6 }
  0x2a   : > { %699 = vmatprep.subr.mxu0 %v253_v7  ;;  %784 = vmatprep.subr.mxu1 %v253_v7 }
  0x2b   : > { %700 = vmatpush3.msra.mxu0 %v253_v7  ;;  %800 = vmatpush3.msra.mxu1 %v253_v7 }
  0x2c   : > { %701 = vmatprep.subr.mxu0 %v252_v8  ;;  %785 = vmatprep.subr.mxu1 %v252_v8 }
  0x2d   : > { %702 = vmatpush3.msra.mxu0 %v252_v8  ;;  %801 = vmatpush3.msra.mxu1 %v252_v8 }
  0x2e   : > { %703 = vmatprep.subr.mxu0 %v251_v9  ;;  %786 = vmatprep.subr.mxu1 %v251_v9 }
  0x2f   : > { %704 = vmatpush3.msra.mxu0 %v251_v9  ;;  %802 = vmatpush3.msra.mxu1 %v251_v9 }
  0x30   : > { %705 = vmatprep.subr.mxu0 %v250_v10  ;;  %719 = vmatprep.mubr.f32.mxu0 %v228_v11 }
  0x31   : > { %706 = vmatpush3.msra.mxu0 %v250_v10  ;;  %787 = vmatprep.subr.mxu1 %v250_v10 }
  0x32   : > { %707 = vmatprep.subr.mxu0 %v249_v12  ;;  %803 = vmatpush3.msra.mxu1 %v250_v10 }
  0x33   : > { %708 = vmatpush3.msra.mxu0 %v249_v12  ;;  %788 = vmatprep.subr.mxu1 %v249_v12 }
  0x34   : > { %709 = vmatprep.subr.mxu0 %v248_v13  ;;  %804 = vmatpush3.msra.mxu1 %v249_v12 }
  0x35   : > { %710 = vmatpush3.msra.mxu0 %v248_v13  ;;  %789 = vmatprep.subr.mxu1 %v248_v13 }
  0x36   : > { %711 = vmatprep.subr.mxu0 %v247_v14  ;;  %805 = vmatpush3.msra.mxu1 %v248_v13 }
  0x37   : > { %712 = vmatpush3.msra.mxu0 %v247_v14  ;;  %790 = vmatprep.subr.mxu1 %v247_v14 }
  0x38   : > { %713 = vmatprep.subr.mxu0 %v246_v15  ;;  %806 = vmatpush3.msra.mxu1 %v247_v14 }
  0x39   : > { %714 = vmatpush3.msra.mxu0 %v246_v15  ;;  %791 = vmatprep.subr.mxu1 %v246_v15 }
  0x3a   : > { %715 = vmatprep.subr.mxu0 %v245_v16  ;;  %807 = vmatpush3.msra.mxu1 %v246_v15 }
  0x3b   : > { %716 = vmatpush3.msra.mxu0 %v245_v16  ;;  %792 = vmatprep.subr.mxu1 %v245_v16 }
  0x3c   : > { %717 = vmatprep.subr.mxu0 %v244_v17  ;;  %808 = vmatpush3.msra.mxu1 %v245_v16 }
  0x3d   : > { %718 = vmatpush3.msra.mxu0 %v244_v17  ;;  %793 = vmatprep.subr.mxu1 %v244_v17 }
  0x3e   : > { %720 = vmatmul.mubr.f32.vlgmr.msra.gmra.mxu0 %v229_v18  ;;  %809 = vmatpush3.msra.mxu1 %v244_v17 }
  0x3f   : > { %722 = vmatprep.mubr.f32.mxu0 %v230_v19  ;;  %731 = vmatprep.mubr.f32.mxu1 %v236_v20 }
  0x40   : > { %732 = vmatmul.mubr.f32.vlgmr.msra.gmra.mxu1 %v237_v21  ;;  %v421_v21 = vld [vmem:[#allocation2] sm:$0x1] }
  0x41   : > { %734 = vmatprep.mubr.f32.mxu1 %v238_v22 }
  0x42   : > { %723 = vmatmul.mubr.f32.gmra.mxu0 %v231_v23 }
  0x43   : > { %725 = vmatprep.mubr.f32.mxu0 %v232_v24 }
  0x44   : > { %735 = vmatmul.mubr.f32.gmra.mxu1 %v239_v25 }
  0x45   : > { %737 = vmatprep.mubr.f32.mxu1 %v240_v26 }
  0x46   : > { %726 = vmatmul.mubr.f32.gmra.mxu0 %v233_v27 }
  0x47   : > { %728 = vmatprep.mubr.f32.mxu0 %v234_v28 }
  0x48   : > { %738 = vmatmul.mubr.f32.gmra.mxu1 %v241_v29 }
  0x49   : > { %740 = vmatprep.mubr.f32.mxu1 %v242_v30 }
  0x4a   : > { %729 = vmatmul.mubr.f32.gmra.mxu0 %v235_v31 }
  0x4c   : > { %741 = vmatmul.mubr.f32.gmra.mxu1 %v243_v32 }
  0xfe   : > { %v721_v33 = vpop.f32.mrf.mxu0 }
  0xff   : > { %v406_v39 = vmax.f32 %v721_v33, 0.0 }
 0x100   : > { %v326_v34 = vpop.f32.mrf.mxu0  ;;  %v733_v35 = vpop.f32.mrf.mxu1 }
 0x101   : > { %v405_v36 = vmax.f32 %v326_v34, 0.0  ;;  %v414_v63 = vmax.f32 %v733_v35, 0.0 }
 0x102   : > { %v724_v37 = vpop.f32.mrf.mxu0  ;;  %v366_v38 = vpop.f32.mrf.mxu1 }
 0x103   : > { %v422_v41 = vadd.f32 %v406_v39, %v405_v36  ;;  %v408_v45 = vmax.f32 %v724_v37, 0.0  ;;  %v413_v61 = vmax.f32 %v366_v38, 0.0 }
 0x104   : > { %v336_v40 = vpop.f32.mrf.mxu0  ;;  %v736_v44 = vpop.f32.mrf.mxu1 }
 0x105   : > { %v407_v42 = vmax.f32 %v336_v40, 0.0  ;;  %v416_v4 = vmax.f32 %v736_v44, 0.0 }
 0x106   : > { %v727_v43 = vpop.f32.mrf.mxu0  ;;  %v376_v51 = vpop.f32.mrf.mxu1 }
 0x107   : > { %v423_v46 = vadd.f32 %v422_v41, %v407_v42  ;;  %v410_v52 = vmax.f32 %v727_v43, 0.0  ;;  %v415_v1 = vmax.f32 %v376_v51, 0.0 }
 0x108   : > { %v346_v47 = vpop.f32.mrf.mxu0  ;;  %v739_v57 = vpop.f32.mrf.mxu1 }
 0x109   : > { %v409_v48 = vmax.f32 %v346_v47, 0.0  ;;  %v424_v49 = vadd.f32 %v423_v46, %v408_v45  ;;  %v418_v9 = vmax.f32 %v739_v57, 0.0 }
 0x10a   : > { %v730_v50 = vpop.f32.mrf.mxu0  ;;  %v386_v62 = vpop.f32.mrf.mxu1 }
 0x10b   : > { %v425_v53 = vadd.f32 %v424_v49, %v409_v48  ;;  %v412_v58 = vmax.f32 %v730_v50, 0.0  ;;  %v417_v6 = vmax.f32 %v386_v62, 0.0 }
 0x10c   : > { %v356_v54 = vpop.f32.mrf.mxu0  ;;  %v742_v3 = vpop.f32.mrf.mxu1 }
 0x10d   : > { %v411_v55 = vmax.f32 %v356_v54, 0.0  ;;  %v426_v56 = vadd.f32 %v425_v53, %v410_v52  ;;  %v420_v13 = vmax.f32 %v742_v3, 0.0 }
 0x10e   : > { %v396_v8 = vpop.f32.mrf.mxu1 }
 0x10f   : > { %v427_v59 = vadd.f32 %v426_v56, %v411_v55  ;;  %v419_v11 = vmax.f32 %v396_v8, 0.0 }
 0x111   : > { %v428_v60 = vadd.f32 %v427_v59, %v412_v58 }
 0x113   : > { %v429_v0 = vadd.f32 %v428_v60, %v413_v61 }
 0x115   : > { %v430_v2 = vadd.f32 %v429_v0, %v414_v63 }
 0x117   : > { %v431_v5 = vadd.f32 %v430_v2, %v415_v1 }
 0x119   : > { %v432_v7 = vadd.f32 %v431_v5, %v416_v4 }
 0x11b   : > { %v433_v10 = vadd.f32 %v432_v7, %v417_v6 }
 0x11d   : > { %v434_v12 = vadd.f32 %v433_v10, %v418_v9 }
 0x11f   : > { %v435_v14 = vadd.f32 %v434_v12, %v419_v11 }
 0x121   : > { %v436_v15 = vadd.f32 %v435_v14, %v420_v13 }
 0x123   : > { %v437_v16 = vrot.slane %v436_v15, 4 }
 0x125   : > { %v438_v17 = vadd.f32 %v437_v16, %v436_v15 }
 0x127   : > { %v439_v18 = vrot.slane %v438_v17, 2 }
 0x129   : > { %v440_v19 = vadd.f32 %v439_v18, %v438_v17 }
 0x12b   : > { %v441_v20 = vrot.slane %v440_v19, 1 }
 0x12d   : > { %v442_v22 = vadd.f32 %v441_v20, %v440_v19  ;;  %448 = sbr.rel (%p634_p1) target bundleno = 537 (0x219), region = 44 }
 0x12f   : > { %v443_v23 = vadd.f32 %v442_v22, %v421_v21 }
 0x131   : > { %444 = vst [vmem:[#allocation2] sm:$0x1] %v443_v23 }
 0x132   : > { %v466_v24 = vld [vmem:[%s1256_s2 + $0x78] sm:$0xff]  ;;  %v979_v25 = vmov 0.0   ;;  %v465_v26 = vld [vmem:[%s1256_s2 + $0x70] sm:$0xff]  ;;  %vm980_vm0 = vmmov 0   ;;  %v464_v27 = vld [vmem:[%s1256_s2 + $0x68] sm:$0xff] }
 0x133   : > { %743 = vmatprep.subr.mxu0 %v979_v25  ;;  %775 = vmatprep.mubr.msk.f32.mxu0 %vm980_vm0, %v979_v25  ;;  %v463_v28 = vld [vmem:[%s1256_s2 + $0x60] sm:$0xff]  ;;  %v462_v29 = vld [vmem:[%s1256_s2 + $0x58] sm:$0xff]  ;;  %v461_v30 = vld [vmem:[%s1256_s2 + $0x50] sm:$0xff] }
 0x134   : > { %744 = vmatpush3.msra.mxu0 %v466_v24  ;;  %v460_v31 = vld [vmem:[%s1256_s2 + $0x48] sm:$0xff]  ;;  %v459_v32 = vld [vmem:[%s1256_s2 + $0x40] sm:$0xff]  ;;  %v458_v33 = vld [vmem:[%s1256_s2 + $0x38] sm:$0xff] }
 0x135   : > { %745 = vmatprep.subr.mxu0 %v979_v25  ;;  %v457_v34 = vld [vmem:[%s1256_s2 + $0x30] sm:$0xff]  ;;  %v456_v35 = vld [vmem:[%s1256_s2 + $0x28] sm:$0xff]  ;;  %v455_v36 = vld [vmem:[%s1256_s2 + $0x20] sm:$0xff] }
 0x136   : > { %746 = vmatpush3.msra.mxu0 %v465_v26  ;;  %v454_v37 = vld [vmem:[%s1256_s2 + $0x18] sm:$0xff]  ;;  %v453_v38 = vld [vmem:[%s1256_s2 + $0x10] sm:$0xff]  ;;  %v452_v40 = vld [vmem:[%s1256_s2 + $0x8] sm:$0xff] }
 0x137   : > { %747 = vmatprep.subr.mxu0 %v979_v25  ;;  %v451_v41 = vld [vmem:[%s1256_s2] sm:$0xff] }
 0x138   : > { %748 = vmatpush3.msra.mxu0 %v464_v27  ;;  %v449_v39 = vld [vmem:[#allocation2] sm:$0x1] }
 0x139   : > { %749 = vmatprep.subr.mxu0 %v979_v25  ;;  %v450_v42 = vmul.f32 0.0011111111, %v449_v39  ;;  %v467_v43 = vld [vmem:[%s1257_s3] sm:$0x1] }
 0x13a   : > { %750 = vmatpush3.msra.mxu0 %v463_v28 }
 0x13b   : > { %751 = vmatprep.subr.mxu0 %v979_v25 }
 0x13c   : > { %752 = vmatpush3.msra.mxu0 %v462_v29 }
 0x13d   : > { %753 = vmatprep.subr.mxu0 %v979_v25 }
 0x13e   : > { %754 = vmatpush3.msra.mxu0 %v461_v30 }
 0x13f   : > { %755 = vmatprep.subr.mxu0 %v979_v25 }
 0x140   : > { %756 = vmatpush3.msra.mxu0 %v460_v31 }
 0x141   : > { %757 = vmatprep.subr.mxu0 %v979_v25 }
 0x142   : > { %758 = vmatpush3.msra.mxu0 %v459_v32 }
 0x143   : > { %759 = vmatprep.subr.mxu0 %v979_v25 }
 0x144   : > { %760 = vmatpush3.msra.mxu0 %v458_v33 }
 0x145   : > { %761 = vmatprep.subr.mxu0 %v979_v25 }
 0x146   : > { %762 = vmatpush3.msra.mxu0 %v457_v34 }
 0x147   : > { %763 = vmatprep.subr.mxu0 %v979_v25 }
 0x148   : > { %764 = vmatpush3.msra.mxu0 %v456_v35 }
 0x149   : > { %765 = vmatprep.subr.mxu0 %v979_v25 }
 0x14a   : > { %766 = vmatpush3.msra.mxu0 %v455_v36 }
 0x14b   : > { %767 = vmatprep.subr.mxu0 %v979_v25 }
 0x14c   : > { %768 = vmatpush3.msra.mxu0 %v454_v37 }
 0x14d   : > { %769 = vmatprep.subr.mxu0 %v979_v25 }
 0x14e   : > { %770 = vmatpush3.msra.mxu0 %v453_v38 }
 0x14f   : > { %771 = vmatprep.subr.mxu0 %v979_v25 }
 0x150   : > { %772 = vmatpush3.msra.mxu0 %v452_v40 }
 0x151   : > { %773 = vmatprep.subr.mxu0 %v979_v25 }
 0x152   : > { %774 = vmatpush3.msra.mxu0 %v451_v41 }
 0x153   : > { %776 = vmatmul.mubr.f32.vlgmr.msra.gmra.mxu0 %v450_v42 }
 0x213   : > { %v534_v44 = vpop.f32.mrf.mxu0 }
 0x214   : > { %v535_v45 = vadd.f32 %v534_v44, %v467_v43 }
 0x215   : > { %v777_v46 = vpop.f32.mrf.mxu0 }
 0x216   : > { %v538_v47 = vmax.f32 %v535_v45, 0.0 }
 0x218   : > { %539 = vst [vmem:[%s1087_s23] sm:$0x1] %v538_v47 }
 0x219 PF: > { %s635_s24 = sshll.u32 %s964_s19, 4  ;;  %s553_s7 = sshll.u32 %s1087_s23, 4  ;;  %s554_s7 = int_to_ptr.vmem [resolvable:$true] %s553_s7 }
 0x21a   : > { %s551_s30 = scalar_lea.hbm %s1258_s4, %s635_s24  ;;  %s541_s8 = scalar_lea.sflag [#allocation4], %s211_s6 }
 0x21b   : > { %s884_s9 = scalar_lea.vmem %s554_s7, 16  ;;  %s981_s10 = smov [#allocation3]  }
 0x21c   : > { %p885_p2 = scmp.ne.s32.totalorder %s554_s7, %s884_s9  ;;  %s888_s18 = sshll.u32 %s981_s10, 4  ;;  %s889_s18 = int_to_ptr.vmem [resolvable:$false] %s888_s18 }
 0x21d   : > { %s890_s11 = scalar_lea.vmem %s889_s18, 32  ;;  %p891_p6 = scmp.lt.s32.totalorder %s554_s7, %s889_s18 }
 0x21e   : > { %p886_p4 = pnand %p885_p2, %p1056_p3  ;;  %p892_p7 = scmp.lt.s32.totalorder %s890_s11, %s884_s9 }
 0x220   : > { %p887_p5 = pneg %p886_p4  ;;  %p893_p8 = por %p892_p7, %p891_p6 }
 0x222   : > { %p894_p10 = pnand %p893_p8, %p887_p5 }
 0x224   : > { %897 = shalt.err (!%p894_p10)
}
 0x225   : > { %s898_s19 = scalar_lea.hbm %s551_s30, 16  ;;  %s902_s12 = scalar_lea.hbm %s1258_s4, 32 }
 0x226   : > { %p899_p11 = scmp.ne.s32.totalorder %s551_s30, %s898_s19  ;;  %p903_p0 = scmp.lt.s32.totalorder %s551_s30, %s1258_s4 }
 0x227   : > { %p904_p1 = scmp.lt.s32.totalorder %s902_s12, %s898_s19 }
 0x228   : > { %p900_p12 = pnand %p899_p11, %p1056_p3 }
 0x229   : > { %p905_p2 = por %p904_p1, %p903_p0 }
 0x22a   : > { %p901_p13 = pneg %p900_p12 }
 0x22c   : > { %p906_p4 = pnand %p905_p2, %p901_p13 }
 0x22e   : > { %909 = shalt.err (!%p906_p4)
}
 0x22f   : > { %810 = dma.vmem_to_hbm [thread:$0]  (%p1056_p3), %s554_s7, 16, %s551_s30, %s541_s8  }
 0x230 PF: > { %p816_p5 = scmp.ge.s32.totalorder %s976_s22, 2  ;;  %s565_s29 = sand.u32 1, %s948_s15  }
 0x231   : > { %s566_s14 = scalar_lea.sflag [#allocation4], %s565_s29 }
 0x232   : > { %p813_p6 = pnand %p816_p5, %p1066_p9 }
 0x234   : > { %p814_p7 = pneg %p813_p6 }
 0x236   : > { %943 = dma.done.wait (%p814_p7), %s566_s14, 16  }
 0x237   : > { %945 = vsyncadd (%p814_p7), %s566_s14, 4294967280  ;;  %s17_s22 = sadd.s32 1, %s976_s22   ;;  %s1261_s15 = smov %s952_s16 }
 0x238   : > { %p14_p8 = scmp.ge.s32.totalorder %s17_s22, 18   ;;  %s1262_s16 = smov %s956_s17 }
 0x239   : > { %s1263_s17 = smov %s1074_s5  ;;  %s1264_s18 = smov %s968_s20 }
 0x23a   : > { %s1265_s19 = smov %s972_s21  ;;  %s1266_s20 = smov %s1269_s25 }
 0x23b   : > { %s1267_s21 = smov %s1273_s26  ;;  %16 = sbr.rel (!%p14_p8) target bundleno = 5 (0x5), region = 79 }
 0x240   :  { %570 = vsyncpa [#allocation4], 1 }
 0x241   :  { %572 = vsyncpa [#allocation4 + $0x1], 1 }

</bundles_post_ra>
